<compile_context>
chip_gen: v7x
topology: tpu7x:2x2x1
jax: 0.10.0
libtpu: 0.0.40
codegen_flags: <defaults>
</compile_context>

<pallas_src>
import jax
import jax.numpy as jnp
from jax import lax
from jax.experimental import pallas as pl
from jax.experimental.pallas import tpu as pltpu

# Hyperparameters (nn.Parameter buffers in the PyTorch module, baked in here).
HISTORY_LENGTH = 6
WARMUP_ITERS = 3
DEPRESSION_STRENGTH = 1.0
DISCRETE_AMOUNT = 0.005
LENIENCY = 1.0

HP1 = HISTORY_LENGTH + 1          # history buffer width (cols 0 .. HP1-1)
STATE_WIDTH = 128                 # lane-dense packed state row (one vreg row / source)
COL_CNT = HP1                     # fill-count column
COL_U = HP1 + 1                   # source_unreliability column
assert COL_U < STATE_WIDTH, "history_length too large for a single 128-lane state row"


def _slw_kernel(step_ref,           # SMEM (1,)  int32
                losses_ref,         # VMEM (1, B) f32
                sources_ref,        # VMEM (1, B) i32
                state_ref,          # VMEM (S, W) f32   packed per-source state
                out_losses_ref,     # VMEM (1, B) f32
                out_state_ref):     # VMEM (S, W) f32   (aliased onto state_ref)
    losses = losses_ref[...]
    sources = sources_ref[...]
    st = state_ref[...]
    step = step_ref[0]

    S, W = st.shape
    B = losses.shape[1]
    N = float(HISTORY_LENGTH)

    cnt_state = st[:, COL_CNT:COL_CNT + 1]      # (S,1) fill count
    u_state = st[:, COL_U:COL_U + 1]            # (S,1) unreliability

    # ---- per-source mean loss:  to_sum @ losses / to_sum.sum(dim=1) ----------
    src_ids = lax.broadcasted_iota(jnp.int32, (S, B), 0)
    onehot = (jnp.broadcast_to(sources, (S, B)) == src_ids).astype(jnp.float32)
    count = jnp.sum(onehot, axis=1, keepdims=True)                 # (S,1)
    present = count > 0.0                                          # (S,1)
    src_sum = jnp.sum(onehot * losses, axis=1, keepdims=True)      # (S,1)
    mean_source_loss = src_sum / jnp.where(present, count, 1.0)    # (S,1)

    # ---- shift history left for present sources, insert new mean at col HP1-1
    # Single XLU lane rotation over the whole 128-lane row (jnp.roll convention:
    # shift = W-1 rotates left by one lane). Non-history columns are either
    # preserved by the mask below or overwritten explicitly at the end.
    col = lax.broadcasted_iota(jnp.int32, (S, W), 1)
    hist_mask = col < HP1
    last_hist = col == (HP1 - 1)
    rolled = pltpu.roll(st, STATE_WIDTH - 1, 1)   # rolled[:, j] == st[:, (j+1) % W]
    shifted = jnp.where(last_hist,
                        jnp.broadcast_to(mean_source_loss, (S, W)), rolled)
    present_b = jnp.broadcast_to(present, (S, W))
    # new_row == st outside the history columns, so it is directly storable.
    new_row = jnp.where(jnp.logical_and(hist_mask, present_b), shifted, st)

    # ---- fill count & completeness -------------------------------------------
    cnt_new = jnp.minimum(cnt_state + present.astype(jnp.float32), N)   # (S,1)
    complete = cnt_new >= N                                              # (S,1)
    present_complete = jnp.logical_and(present, complete)                # (S,1)

    # ---- per-source window sums, recomputed from the tail (cols 1..HP1-1) ----
    tail_mask = jnp.logical_and(col >= 1, hist_mask)
    lh_tail = jnp.where(tail_mask, new_row, 0.0)
    sums = jnp.sum(lh_tail, axis=1, keepdims=True)                # (S,1)
    sqs = jnp.sum(lh_tail * lh_tail, axis=1, keepdims=True)       # (S,1)

    # ---- unreliability update (vectorised _update_source_unreliability) ------
    m = DISCRETE_AMOUNT * DEPRESSION_STRENGTH
    w = 1.0 - jnp.tanh(m * u_state) ** 2                          # (S,1), > 0
    comp_f = complete.astype(jnp.float32)
    pc_f = present_complete.astype(jnp.float32)
    w_c = w * comp_f
    w_s = w_c * sums
    w_q = w_c * sqs

    # Fuse the five scalar reductions into one (S, 8)-tile sublane reduce.
    lane8 = lax.broadcasted_iota(jnp.int32, (S, 8), 1)
    packed_cols = jnp.where(lane8 == 0, w_c,
                  jnp.where(lane8 == 1, w_s,
                  jnp.where(lane8 == 2, w_q,
                  jnp.where(lane8 == 3, comp_f,
                  jnp.where(lane8 == 4, pc_f, 0.0)))))
    totals = jnp.sum(packed_cols, axis=0, keepdims=True)          # (1,8)
    total_w = totals[:, 0:1]
    total_ws = totals[:, 1:2]
    total_wsq = totals[:, 2:3]
    num_complete = totals[:, 3:4]
    num_pc = totals[:, 4:5]

    enable = jnp.logical_and(
        jnp.logical_and(num_complete >= 2.0, num_pc > 0.0),
        step >= WARMUP_ITERS)                                     # (1,1)

    not_w = total_w - w_c                                         # (S,1)
    not_ws = total_ws - w_s
    not_wsq = total_wsq - w_q

    mean_source = sums / N
    # Guard not_w == 0 (no other effectively-weighted complete source) and
    # negative variance from fp cancellation -> no NaN/Inf, movement = 0.
    denom = not_w * N
    denom_ok = denom > 0.0
    safe_denom = jnp.where(denom_ok, denom, 1.0)
    mean_not = not_ws / safe_denom
    var_not = jnp.maximum(not_wsq / safe_denom - mean_not * mean_not, 0.0)
    std_not = jnp.sqrt(var_not)
    # torch.isclose(std, 0) with default atol=1e-8, rtol=1e-5 -> |std| <= 1e-8
    stable = jnp.logical_and(denom_ok, std_not > 1e-8)
    movement = jnp.where(
        stable,
        jnp.where(mean_source < mean_not + LENIENCY * std_not, -1.0, 1.0),
        0.0)
    u_cand = jnp.maximum(u_state + movement, 0.0)

    upd_mask = jnp.logical_and(enable, present_complete)          # (S,1)
    u_new = jnp.where(upd_mask, u_cand, u_state)

    # ---- depression multiplier and output ------------------------------------
    # Sources not updated this step (not present&complete, or enable gated off)
    # get depression 0 -> multiplier exactly 1, as in the reference.
    depression = jnp.where(upd_mask, DISCRETE_AMOUNT * u_cand, 0.0)          # (S,1)
    multiplier = 1.0 - jnp.tanh(depression * DEPRESSION_STRENGTH) ** 2       # (S,1)
    mult_out = jnp.sum(onehot * multiplier, axis=0, keepdims=True)           # (1,B)

    out_losses_ref[...] = losses * mult_out

    # ---- state writeback: one full-row store + two masked column stores ------
    out_state_ref[...] = new_row
    out_state_ref[:, COL_CNT:COL_CNT + 1] = cnt_new
    out_state_ref[:, COL_U:COL_U + 1] = u_new


def init_state(num_sources: int):
    """Packed initial state: zero history, zero fill count / unreliability, step = 0."""
    st = jnp.zeros((num_sources, STATE_WIDTH), dtype=jnp.float32)
    return st, jnp.array(0, dtype=jnp.int32)


def unpack_state(packed):
    """For inspection: (loss_history, fill_count, source_unreliability)."""
    return packed[:, :HP1], packed[:, COL_CNT], packed[:, COL_U]


def source_loss_weighting_forward(losses, sources, state):
    """One forward step. state = (packed_state (S, STATE_WIDTH) f32, step_count i32)."""
    packed, step = state
    B = losses.shape[0]
    S = packed.shape[0]

    # Only free reshapes / no-op dtype converts here: no padding, no output slice.
    losses2 = losses.astype(jnp.float32).reshape(1, B)
    sources2 = sources.astype(jnp.int32).reshape(1, B)
    step_arr = jnp.reshape(step, (1,)).astype(jnp.int32)

    vmem = pl.BlockSpec(memory_space=pltpu.MemorySpace.VMEM)
    smem = pl.BlockSpec(memory_space=pltpu.MemorySpace.SMEM)

    out_losses, packed_new = pl.pallas_call(
        _slw_kernel,
        out_shape=(jax.ShapeDtypeStruct((1, B), jnp.float32),
                   jax.ShapeDtypeStruct((S, STATE_WIDTH), jnp.float32)),
        in_specs=[smem, vmem, vmem, vmem],
        out_specs=(vmem, vmem),
        input_output_aliases={3: 1},   # packed state is updated in place
    )(step_arr, losses2, sources2, packed)

    return out_losses.reshape(B), (packed_new, step + 1)


if __name__ == "__main__":
    B = 8            # batch size
    S = 3            # number of sources

    sources = jnp.array([0, 1, 2, 0, 1, 2, 0, 1], dtype=jnp.int32)
    state = init_state(S)

    key0 = jax.random.PRNGKey(0)
    # Donate the state so the pallas-level aliasing carries through the jit boundary.
    step_fn = jax.jit(source_loss_weighting_forward, donate_argnums=(2,))

    out = None
    losses_t = None
    # Enough steps to fill the history, pass warmup, and hit the depression path.
    for t in range(12):
        key = jax.random.fold_in(key0, t)
        base = jax.random.uniform(key, (B,), minval=0.5, maxval=1.0,
                                  dtype=jnp.float32)
        losses_t = jnp.where(sources == 2, base + 2.0, base)   # source 2 is "bad"
        out, state = step_fn(losses_t, sources, state)

    out = jax.block_until_ready(out)
    assert out.shape == (B,)
    assert bool(jnp.all(jnp.isfinite(out)))

    # Behavioral sanity: after warmup + a full history window, the noisy source
    # (2) must be down-weighted while clean sources pass through unchanged.
    bad = sources == 2
    good_ok = jnp.abs(out - losses_t) <= 1e-6 * losses_t
    bad_down = out < losses_t
    assert bool(jnp.all(jnp.where(bad, bad_down, good_ok)))

    print("KERNEL_OK")
</pallas_src>

<mosaic_0001>
module attributes {stable_mosaic.version = 11 : i64} {
  func.func @_slw_kernel(%arg0: memref<1xi32, #tpu.memory_space<smem>>, %arg1: memref<1x8xf32, #tpu.memory_space<vmem>>, %arg2: memref<1x8xi32, #tpu.memory_space<vmem>>, %arg3: memref<3x128xf32, #tpu.memory_space<vmem>>, %arg4: memref<1x8xf32, #tpu.memory_space<vmem>>, %arg5: memref<3x128xf32, #tpu.memory_space<vmem>>) attributes {dimension_semantics = [], scalar_prefetch = 0 : i64, scratch_operands = 0 : i64, tpu.core_type = #tpu.core_type<tc>} {
    %c0 = arith.constant 0 : index
    %c0_0 = arith.constant 0 : index
    %0 = vector.load %arg1[%c0, %c0_0] : memref<1x8xf32, #tpu.memory_space<vmem>>, vector<1x8xf32>
    %c0_1 = arith.constant 0 : index
    %c0_2 = arith.constant 0 : index
    %1 = vector.load %arg2[%c0_1, %c0_2] : memref<1x8xi32, #tpu.memory_space<vmem>>, vector<1x8xi32>
    %c0_3 = arith.constant 0 : index
    %c0_4 = arith.constant 0 : index
    %2 = vector.load %arg3[%c0_3, %c0_4] : memref<3x128xf32, #tpu.memory_space<vmem>>, vector<3x128xf32>
    %c0_5 = arith.constant 0 : index
    %3 = memref.load %arg0[%c0_5] : memref<1xi32, #tpu.memory_space<smem>>
    %4 = vector.extract_strided_slice %2 {offsets = [0, 7], sizes = [3, 1], strides = [1, 1]} : vector<3x128xf32> to vector<3x1xf32>
    %5 = vector.extract_strided_slice %2 {offsets = [0, 8], sizes = [3, 1], strides = [1, 1]} : vector<3x128xf32> to vector<3x1xf32>
    %6 = tpu.iota {dimensions = array<i32: 0>} : vector<3x8xi32>
    %7 = vector.shape_cast %1 : vector<1x8xi32> to vector<1x8xi32>
    %8 = vector.broadcast %7 : vector<1x8xi32> to vector<3x8xi32>
    %9 = arith.cmpi eq, %8, %6 : vector<3x8xi32>
    %10 = arith.extui %9 : vector<3x8xi1> to vector<3x8xi32>
    %11 = arith.sitofp %10 : vector<3x8xi32> to vector<3x8xf32>
    %cst = arith.constant dense<0.000000e+00> : vector<3xf32>
    %12 = vector.multi_reduction <add>, %11, %cst [1] : vector<3x8xf32> to vector<3xf32>
    %13 = vector.shape_cast %12 : vector<3xf32> to vector<3x1xf32>
    %cst_6 = arith.constant 0.000000e+00 : f32
    %14 = vector.broadcast %cst_6 : f32 to vector<3x1xf32>
    %15 = arith.cmpf ogt, %13, %14 : vector<3x1xf32>
    %16 = vector.broadcast %0 : vector<1x8xf32> to vector<3x8xf32>
    %17 = arith.mulf %11, %16 : vector<3x8xf32>
    %cst_7 = arith.constant dense<0.000000e+00> : vector<3xf32>
    %18 = vector.multi_reduction <add>, %17, %cst_7 [1] : vector<3x8xf32> to vector<3xf32>
    %19 = vector.shape_cast %18 : vector<3xf32> to vector<3x1xf32>
    %cst_8 = arith.constant 1.000000e+00 : f32
    %20 = vector.broadcast %cst_8 : f32 to vector<3x1xf32>
    %21 = arith.select %15, %13, %20 : vector<3x1xi1>, vector<3x1xf32>
    %22 = arith.divf %19, %21 : vector<3x1xf32>
    %23 = tpu.iota {dimensions = array<i32: 1>} : vector<3x128xi32>
    %c7_i32 = arith.constant 7 : i32
    %24 = vector.broadcast %c7_i32 : i32 to vector<3x128xi32>
    %25 = arith.cmpi slt, %23, %24 : vector<3x128xi32>
    %c6_i32 = arith.constant 6 : i32
    %26 = vector.broadcast %c6_i32 : i32 to vector<3x128xi32>
    %27 = arith.cmpi eq, %23, %26 : vector<3x128xi32>
    %c127_i32 = arith.constant 127 : i32
    %28 = tpu.dynamic_rotate %2 by %c127_i32 dim 1 : vector<3x128xf32>, i32 -> vector<3x128xf32>
    %29 = vector.shape_cast %22 : vector<3x1xf32> to vector<3x1xf32>
    %30 = vector.broadcast %29 : vector<3x1xf32> to vector<3x128xf32>
    %31 = arith.select %27, %30, %28 : vector<3x128xi1>, vector<3x128xf32>
    %32 = vector.shape_cast %15 : vector<3x1xi1> to vector<3x1xi1>
    %33 = vector.broadcast %32 : vector<3x1xi1> to vector<3x128xi1>
    %34 = arith.andi %25, %33 : vector<3x128xi1>
    %35 = arith.select %34, %31, %2 : vector<3x128xi1>, vector<3x128xf32>
    %36 = arith.extui %15 : vector<3x1xi1> to vector<3x1xi32>
    %37 = arith.sitofp %36 : vector<3x1xi32> to vector<3x1xf32>
    %38 = arith.addf %4, %37 : vector<3x1xf32>
    %cst_9 = arith.constant 6.000000e+00 : f32
    %39 = vector.broadcast %cst_9 : f32 to vector<3x1xf32>
    %40 = arith.minimumf %38, %39 : vector<3x1xf32>
    %cst_10 = arith.constant 6.000000e+00 : f32
    %41 = vector.broadcast %cst_10 : f32 to vector<3x1xf32>
    %42 = arith.cmpf oge, %40, %41 : vector<3x1xf32>
    %43 = arith.andi %15, %42 : vector<3x1xi1>
    %c1_i32 = arith.constant 1 : i32
    %44 = vector.broadcast %c1_i32 : i32 to vector<3x128xi32>
    %45 = arith.cmpi sge, %23, %44 : vector<3x128xi32>
    %46 = arith.andi %45, %25 : vector<3x128xi1>
    %cst_11 = arith.constant 0.000000e+00 : f32
    %47 = vector.broadcast %cst_11 : f32 to vector<3x128xf32>
    %48 = arith.select %46, %35, %47 : vector<3x128xi1>, vector<3x128xf32>
    %cst_12 = arith.constant dense<0.000000e+00> : vector<3xf32>
    %49 = vector.multi_reduction <add>, %48, %cst_12 [1] : vector<3x128xf32> to vector<3xf32>
    %50 = vector.shape_cast %49 : vector<3xf32> to vector<3x1xf32>
    %51 = arith.mulf %48, %48 : vector<3x128xf32>
    %cst_13 = arith.constant dense<0.000000e+00> : vector<3xf32>
    %52 = vector.multi_reduction <add>, %51, %cst_13 [1] : vector<3x128xf32> to vector<3xf32>
    %53 = vector.shape_cast %52 : vector<3xf32> to vector<3x1xf32>
    %cst_14 = arith.constant 5.000000e-03 : f32
    %54 = vector.broadcast %cst_14 : f32 to vector<3x1xf32>
    %55 = arith.mulf %54, %5 : vector<3x1xf32>
    %56 = math.tanh %55 : vector<3x1xf32>
    %57 = arith.mulf %56, %56 : vector<3x1xf32>
    %cst_15 = arith.constant 1.000000e+00 : f32
    %58 = vector.broadcast %cst_15 : f32 to vector<3x1xf32>
    %59 = arith.subf %58, %57 : vector<3x1xf32>
    %60 = arith.extui %42 : vector<3x1xi1> to vector<3x1xi32>
    %61 = arith.sitofp %60 : vector<3x1xi32> to vector<3x1xf32>
    %62 = arith.extui %43 : vector<3x1xi1> to vector<3x1xi32>
    %63 = arith.sitofp %62 : vector<3x1xi32> to vector<3x1xf32>
    %64 = arith.mulf %59, %61 : vector<3x1xf32>
    %65 = arith.mulf %64, %50 : vector<3x1xf32>
    %66 = arith.mulf %64, %53 : vector<3x1xf32>
    %67 = tpu.iota {dimensions = array<i32: 1>} : vector<3x8xi32>
    %c0_i32 = arith.constant 0 : i32
    %68 = vector.broadcast %c0_i32 : i32 to vector<3x8xi32>
    %69 = arith.cmpi eq, %67, %68 : vector<3x8xi32>
    %c1_i32_16 = arith.constant 1 : i32
    %70 = vector.broadcast %c1_i32_16 : i32 to vector<3x8xi32>
    %71 = arith.cmpi eq, %67, %70 : vector<3x8xi32>
    %c2_i32 = arith.constant 2 : i32
    %72 = vector.broadcast %c2_i32 : i32 to vector<3x8xi32>
    %73 = arith.cmpi eq, %67, %72 : vector<3x8xi32>
    %c3_i32 = arith.constant 3 : i32
    %74 = vector.broadcast %c3_i32 : i32 to vector<3x8xi32>
    %75 = arith.cmpi eq, %67, %74 : vector<3x8xi32>
    %c4_i32 = arith.constant 4 : i32
    %76 = vector.broadcast %c4_i32 : i32 to vector<3x8xi32>
    %77 = arith.cmpi eq, %67, %76 : vector<3x8xi32>
    %cst_17 = arith.constant 0.000000e+00 : f32
    %78 = vector.shape_cast %63 : vector<3x1xf32> to vector<3x1xf32>
    %79 = vector.broadcast %78 : vector<3x1xf32> to vector<3x8xf32>
    %80 = vector.broadcast %cst_17 : f32 to vector<3x8xf32>
    %81 = arith.select %77, %79, %80 : vector<3x8xi1>, vector<3x8xf32>
    %82 = vector.shape_cast %61 : vector<3x1xf32> to vector<3x1xf32>
    %83 = vector.broadcast %82 : vector<3x1xf32> to vector<3x8xf32>
    %84 = arith.select %75, %83, %81 : vector<3x8xi1>, vector<3x8xf32>
    %85 = vector.shape_cast %66 : vector<3x1xf32> to vector<3x1xf32>
    %86 = vector.broadcast %85 : vector<3x1xf32> to vector<3x8xf32>
    %87 = arith.select %73, %86, %84 : vector<3x8xi1>, vector<3x8xf32>
    %88 = vector.shape_cast %65 : vector<3x1xf32> to vector<3x1xf32>
    %89 = vector.broadcast %88 : vector<3x1xf32> to vector<3x8xf32>
    %90 = arith.select %71, %89, %87 : vector<3x8xi1>, vector<3x8xf32>
    %91 = vector.shape_cast %64 : vector<3x1xf32> to vector<3x1xf32>
    %92 = vector.broadcast %91 : vector<3x1xf32> to vector<3x8xf32>
    %93 = arith.select %69, %92, %90 : vector<3x8xi1>, vector<3x8xf32>
    %cst_18 = arith.constant dense<0.000000e+00> : vector<8xf32>
    %94 = vector.multi_reduction <add>, %93, %cst_18 [0] : vector<3x8xf32> to vector<8xf32>
    %95 = vector.shape_cast %94 : vector<8xf32> to vector<1x8xf32>
    %96 = vector.extract_strided_slice %95 {offsets = [0, 0], sizes = [1, 1], strides = [1, 1]} : vector<1x8xf32> to vector<1x1xf32>
    %97 = vector.extract_strided_slice %95 {offsets = [0, 1], sizes = [1, 1], strides = [1, 1]} : vector<1x8xf32> to vector<1x1xf32>
    %98 = vector.extract_strided_slice %95 {offsets = [0, 2], sizes = [1, 1], strides = [1, 1]} : vector<1x8xf32> to vector<1x1xf32>
    %99 = vector.extract_strided_slice %95 {offsets = [0, 3], sizes = [1, 1], strides = [1, 1]} : vector<1x8xf32> to vector<1x1xf32>
    %100 = vector.extract_strided_slice %95 {offsets = [0, 4], sizes = [1, 1], strides = [1, 1]} : vector<1x8xf32> to vector<1x1xf32>
    %cst_19 = arith.constant 2.000000e+00 : f32
    %101 = vector.broadcast %cst_19 : f32 to vector<1x1xf32>
    %102 = arith.cmpf oge, %99, %101 : vector<1x1xf32>
    %cst_20 = arith.constant 0.000000e+00 : f32
    %103 = vector.broadcast %cst_20 : f32 to vector<1x1xf32>
    %104 = arith.cmpf ogt, %100, %103 : vector<1x1xf32>
    %105 = arith.andi %102, %104 : vector<1x1xi1>
    %c3_i32_21 = arith.constant 3 : i32
    %106 = arith.cmpi sge, %3, %c3_i32_21 : i32
    %107 = vector.broadcast %106 : i1 to vector<1x1xi1>
    %108 = arith.andi %105, %107 : vector<1x1xi1>
    %109 = vector.broadcast %96 : vector<1x1xf32> to vector<3x1xf32>
    %110 = arith.subf %109, %64 : vector<3x1xf32>
    %111 = vector.broadcast %97 : vector<1x1xf32> to vector<3x1xf32>
    %112 = arith.subf %111, %65 : vector<3x1xf32>
    %113 = vector.broadcast %98 : vector<1x1xf32> to vector<3x1xf32>
    %114 = arith.subf %113, %66 : vector<3x1xf32>
    %cst_22 = arith.constant 6.000000e+00 : f32
    %115 = vector.broadcast %cst_22 : f32 to vector<3x1xf32>
    %116 = arith.divf %50, %115 : vector<3x1xf32>
    %cst_23 = arith.constant 6.000000e+00 : f32
    %117 = vector.broadcast %cst_23 : f32 to vector<3x1xf32>
    %118 = arith.mulf %110, %117 : vector<3x1xf32>
    %cst_24 = arith.constant 0.000000e+00 : f32
    %119 = vector.broadcast %cst_24 : f32 to vector<3x1xf32>
    %120 = arith.cmpf ogt, %118, %119 : vector<3x1xf32>
    %cst_25 = arith.constant 1.000000e+00 : f32
    %121 = vector.broadcast %cst_25 : f32 to vector<3x1xf32>
    %122 = arith.select %120, %118, %121 : vector<3x1xi1>, vector<3x1xf32>
    %123 = arith.divf %112, %122 : vector<3x1xf32>
    %124 = arith.divf %114, %122 : vector<3x1xf32>
    %125 = arith.mulf %123, %123 : vector<3x1xf32>
    %126 = arith.subf %124, %125 : vector<3x1xf32>
    %cst_26 = arith.constant 0.000000e+00 : f32
    %127 = vector.broadcast %cst_26 : f32 to vector<3x1xf32>
    %128 = arith.maximumf %126, %127 : vector<3x1xf32>
    %129 = math.sqrt %128 : vector<3x1xf32>
    %cst_27 = arith.constant 9.99999993E-9 : f32
    %130 = vector.broadcast %cst_27 : f32 to vector<3x1xf32>
    %131 = arith.cmpf ogt, %129, %130 : vector<3x1xf32>
    %132 = arith.andi %120, %131 : vector<3x1xi1>
    %cst_28 = arith.constant 1.000000e+00 : f32
    %133 = vector.broadcast %cst_28 : f32 to vector<3x1xf32>
    %134 = arith.mulf %133, %129 : vector<3x1xf32>
    %135 = arith.addf %123, %134 : vector<3x1xf32>
    %136 = arith.cmpf olt, %116, %135 : vector<3x1xf32>
    %cst_29 = arith.constant -1.000000e+00 : f32
    %cst_30 = arith.constant 1.000000e+00 : f32
    %137 = vector.broadcast %cst_29 : f32 to vector<3x1xf32>
    %138 = vector.broadcast %cst_30 : f32 to vector<3x1xf32>
    %139 = arith.select %136, %137, %138 : vector<3x1xi1>, vector<3x1xf32>
    %cst_31 = arith.constant 0.000000e+00 : f32
    %140 = vector.broadcast %cst_31 : f32 to vector<3x1xf32>
    %141 = arith.select %132, %139, %140 : vector<3x1xi1>, vector<3x1xf32>
    %142 = arith.addf %5, %141 : vector<3x1xf32>
    %cst_32 = arith.constant 0.000000e+00 : f32
    %143 = vector.broadcast %cst_32 : f32 to vector<3x1xf32>
    %144 = arith.maximumf %142, %143 : vector<3x1xf32>
    %145 = vector.broadcast %108 : vector<1x1xi1> to vector<3x1xi1>
    %146 = arith.andi %145, %43 : vector<3x1xi1>
    %147 = arith.select %146, %144, %5 : vector<3x1xi1>, vector<3x1xf32>
    %cst_33 = arith.constant 5.000000e-03 : f32
    %148 = vector.broadcast %cst_33 : f32 to vector<3x1xf32>
    %149 = arith.mulf %148, %144 : vector<3x1xf32>
    %cst_34 = arith.constant 0.000000e+00 : f32
    %150 = vector.broadcast %cst_34 : f32 to vector<3x1xf32>
    %151 = arith.select %146, %149, %150 : vector<3x1xi1>, vector<3x1xf32>
    %cst_35 = arith.constant 1.000000e+00 : f32
    %152 = vector.broadcast %cst_35 : f32 to vector<3x1xf32>
    %153 = arith.mulf %151, %152 : vector<3x1xf32>
    %154 = math.tanh %153 : vector<3x1xf32>
    %155 = arith.mulf %154, %154 : vector<3x1xf32>
    %cst_36 = arith.constant 1.000000e+00 : f32
    %156 = vector.broadcast %cst_36 : f32 to vector<3x1xf32>
    %157 = arith.subf %156, %155 : vector<3x1xf32>
    %158 = vector.broadcast %157 : vector<3x1xf32> to vector<3x8xf32>
    %159 = arith.mulf %11, %158 : vector<3x8xf32>
    %cst_37 = arith.constant dense<0.000000e+00> : vector<8xf32>
    %160 = vector.multi_reduction <add>, %159, %cst_37 [0] : vector<3x8xf32> to vector<8xf32>
    %161 = vector.shape_cast %160 : vector<8xf32> to vector<1x8xf32>
    %162 = arith.mulf %0, %161 : vector<1x8xf32>
    %c0_38 = arith.constant 0 : index
    %c0_39 = arith.constant 0 : index
    %163 = vector.load %arg4[%c0_38, %c0_39] : memref<1x8xf32, #tpu.memory_space<vmem>>, vector<1x8xf32>
    tpu.vector_store %arg4[%c0_38, %c0_39], %162 {strides = array<i32>} : memref<1x8xf32, #tpu.memory_space<vmem>>, vector<1x8xf32>,
    %c0_40 = arith.constant 0 : index
    %c0_41 = arith.constant 0 : index
    %164 = vector.load %arg5[%c0_40, %c0_41] : memref<3x128xf32, #tpu.memory_space<vmem>>, vector<3x128xf32>
    tpu.vector_store %arg5[%c0_40, %c0_41], %35 {strides = array<i32>} : memref<3x128xf32, #tpu.memory_space<vmem>>, vector<3x128xf32>,
    %c0_42 = arith.constant 0 : index
    %c7 = arith.constant 7 : index
    %165 = vector.load %arg5[%c0_42, %c7] : memref<3x128xf32, #tpu.memory_space<vmem>>, vector<3x1xf32>
    tpu.vector_store %arg5[%c0_42, %c7], %40 {strides = array<i32>} : memref<3x128xf32, #tpu.memory_space<vmem>>, vector<3x1xf32>,
    %c0_43 = arith.constant 0 : index
    %c8 = arith.constant 8 : index
    %166 = vector.load %arg5[%c0_43, %c8] : memref<3x128xf32, #tpu.memory_space<vmem>>, vector<3x1xf32>
    tpu.vector_store %arg5[%c0_43, %c8], %147 {strides = array<i32>} : memref<3x128xf32, #tpu.memory_space<vmem>>, vector<3x1xf32>,
    return
  }
}

</mosaic_0001>

<bundles_post_ra>
// kernel: source_loss_weighting_forward.1
= control target key start
LH: loop header
LB: loop body
LE: loop exit
PB: predicated region body
PF: predicated region fallthrough
CT: control target
= control target key end

     0   :  { %v25_v1 = vlaneseq  ;;  %s505_s0 = inlined_call_operand.<no memory space> [shape: s32[1], index: 0, kind: input, shape index: {}]   ;;  %s506_s1 = inlined_call_operand.vmem [shape: f32[1,8], index: 1, kind: input, shape index: {}]   ;;  %s507_s2 = inlined_call_operand.vmem [shape: s32[1,8], index: 2, kind: input, shape index: {}]   ;;  %s508_s3 = inlined_call_operand.vmem [shape: f32[3,128], index: 3, kind: input, shape index: {}, may-alias: {3,5}]   ;;  %s509_s4 = inlined_call_operand.hbm [shape: f32[1,8], index: 4, kind: output, shape index: {0}]   ;;  %s510_s5 = inlined_call_operand.vmem [shape: f32[3,128], index: 5, kind: output, shape index: {1}, may-alias: {3,5}]  }
   0x1   :  { %v284_v0 = vld [vmem:[%s507_s2] ss:$0 sm:$0xff] }
   0x2   :  { %v407_v2 = vld [vmem:[%s508_s3] sm:$0x7] }
   0x3   :  { %12 = vsyncpa [#allocation4], 0  ;;  %v409_v3 = vshrl.u32 %v25_v1, 7  ;;  %s353_s22 = smov 127   ;;  %vm34_vm0 = vcmask 59392   ;;  %v354_v6 = vmov 0.0  }
   0x4   :  { %56 = vrot.lane.b32.xlu1 %v407_v2, %s353_s22  ;;  %v416_v4 = vld [vmem:[%s506_s1] sm:$0x1]  ;;  %v355_v12 = vmov 7   ;;  %v430_v15 = vand.u32 127, %v25_v1  ;;  %vm71_vm8 = vcmask 1042432   ;;  %vm258_vm9 = vcmask 59448  }
   0x5   :  { %vm31_vm1 = vcmp.eq.s32.totalorder %v284_v0, %v409_v3  ;;  %v42_v5 = vsub.s32 0, %v409_v3  ;;  %307 = vset.pattern.permute.xlu0 %v355_v12  ;;  %v356_v30 = vmov 8   ;;  %s357_s26 = smov 1   ;;  %v79_v34 = vmul.f32 0.005, %v407_v2  ;;  %s358_s27 = smov 120  }
   0x6   :  { %v420_v7 = vsel %vm31_vm1, 1.0, %v354_v6  ;;  %vm68_vm3 = vcmp.ge.s32.totalorder %v430_v15, 1  ;;  %vm55_vm4 = vcmp.eq.s32.totalorder %v430_v15, 6  ;;  %vm54_vm5 = vcmp.lt.s32.totalorder %v430_v15, 7  ;;  %313 = vset.pattern.permute.xlu1 %v356_v30  ;;  %s359_s28 = smov 121   ;;  %s360_s29 = smov 122  }
   0x7   :  { %v35_v8 = vsel %vm34_vm0, %v420_v7, 0.0  ;;  %v43_v9 = vrot.slane %v416_v4, %v42_v5  ;;  %vm69_vm6 = vmand %vm68_vm3, %vm54_vm5  ;;  %vm98_vm12 = vcmp.eq.s32.totalorder %v430_v15, 4  ;;  %vm97_vm13 = vcmp.eq.s32.totalorder %v430_v15, 3  ;;  %s361_s30 = smov 2   ;;  %s363_s6 = smov 126  }
   0x8   :  { %36 = vadd.xlane.f32.xlu0 %v35_v8  ;;  %vm96_vm14 = vcmp.eq.s32.totalorder %v430_v15, 2  ;;  %vm95_vm15 = vcmp.eq.s32.totalorder %v430_v15, 1  ;;  %vm94_vm1 = vcmp.eq.s32.totalorder %v430_v15, 0  ;;  %s365_s7 = smov 8   ;;  %s366_s8 = smov 124  }
   0x9   :  { %v45_v10 = vmul.f32 %v420_v7, %v43_v9  ;;  %s367_s9 = smov 123   ;;  %p142_p0 = scmp.ge.s32.totalorder %s505_s0, 3 }
   0xa   :  { %s369_s0 = smov 5   ;;  %s370_s15 = smov [#allocation3]  }
   0xb   :  { %v46_v11 = vsel %vm34_vm0, %v45_v10, 0.0  ;;  %s143_s12 = scalar_select %p142_p0, 1, 0 }
   0xc   :  { %47 = vadd.xlane.f32.xlu0 %v46_v11  ;;  %s272_s16 = sshll.u32 %s370_s15, 4  ;;  %s273_s16 = int_to_ptr.vmem [resolvable:$true] %s272_s16 }
   0xd   :  { %s329_s17 = scalar_lea.vmem %s273_s16, 16  ;;  %p334_p2 = scmp.lt.s32.totalorder %s273_s16, %s273_s16 }
   0xe   :  { %p330_p1 = scmp.ne.s32.totalorder %s273_s16, %s329_s17 }
  0x76   :  { %v57_v19 = vpop.permute.xlu1 %56 }
  0x95   :  { %v37_v13 = vpop.xlane.xlu0 %36 }
  0x96   :  { %vm38_vm2 = vcmp.gt.f32.partialorder %v37_v13, 0.0 }
  0x97   :  { %v49_v14 = vsel %vm38_vm2, %v37_v13, 1.0  ;;  %v286_v16 = vsel %vm38_vm2, 1.0, %v354_v6  ;;  %vm61_vm7 = vmand %vm54_vm5, %vm38_vm2 }
  0x98   :  { %317 = vrcp.f32 %v49_v14  ;;  %v64_v20 = vadd.f32 %v286_v16, %v407_v2 }
  0x99   :  { %v48_v17 = vpop.xlane.xlu0 %47  ;;  %319 = vtanh.f32 %v79_v34 }
  0x9a   :  { %v65_v24 = vmin.f32 %v64_v20, 6.0 }
  0x9c   :  { %vm66_vm10 = vcmp.ge.f32.partialorder %v65_v24, 6.0 }
  0x9d   :  { %vm446_vm11 = vmand %vm38_vm2, %vm66_vm10  ;;  %v287_v31 = vsel %vm66_vm10, 1.0, %v354_v6 }
  0x9e   :  { %v288_v32 = vsel %vm446_vm11, 1.0, %v354_v6 }
  0x9f   :  { %v308_v33 = vpack.i.bf16 %v287_v31, %v288_v32  ;;  %v364_v32 = vmov 1.0  }
  0xa2   :  { %v318_v18 = vpop.eup %317 }
  0xa3   :  { %v51_v21 = vmul.f32 %v318_v18, %v48_v17  ;;  %v320_v35 = vpop.eup %319 }
  0xa4   :  { %v81_v36 = vmul.f32 %v320_v35, %v320_v35 }
  0xa5   :  { %v58_v22 = vsel %vm55_vm4, %v51_v21, %v57_v19 }
  0xa6   :  { %v62_v23 = vsel %vm61_vm7, %v58_v22, %v407_v2  ;;  %v82_v38 = vsub.f32 1.0, %v81_v36 }
  0xa7   :  { %v70_v25 = vsel %vm69_vm6, %v62_v23, 0.0  ;;  %257 = vst [vmem:[%s510_s5] sm:$0x7] %v62_v23 }
  0xa8   :  { %v72_v26 = vsel %vm71_vm8, %v70_v25, 0.0  ;;  %v75_v27 = vmul.f32 %v70_v25, %v70_v25  ;;  %259 = vst.msk [vmem:[%s510_s5] sm:$0x7] %vm258_vm9, %v65_v24 }
  0xa9   :  { %73 = vadd.xlane.f32.xlu0 %v72_v26  ;;  %v362_v26 = vmov 0  }
  0xaa   :  { %v76_v28 = vsel %vm71_vm8, %v75_v27, 0.0 }
  0xab   :  { %77 = vadd.xlane.f32.xlu1 %v76_v28 }
  0xbf   :  { %88 = vrot.lane.b32.xlu0 %v287_v31, %s357_s26 }
  0xc3   :  { %309 = vperm.xlu0 %307, %v308_v33  }
  0xc7   :  { %314 = vset.pattern.permute.xlu0 %v356_v30 }
 0x136   :  { %v454_v37 = vpop.xlane.xlu0 %73 }
 0x137   :  { %v160_v30 = vmul.f32 0.16666667, %v454_v37 }
 0x138   :  { %v78_v41 = vpop.xlane.xlu1 %77 }
 0x13a   :  { %v89_v39 = vpop.permute.xlu0 %88 }
 0x13b   :  { %v91_v40 = vmul.f32 %v89_v39, %v82_v38 }
 0x13d   :  { %v93_v42 = vmul.f32 %v91_v40, %v78_v41  ;;  %v92_v43 = vmul.f32 %v91_v40, %v454_v37  ;;  %v85_v37 = vsel %vm446_vm11, 1, %v362_v26 }
 0x13f   :  { %112 = vperm.xlu1 %313, %v93_v42   ;;  %118 = vperm.xlu0 %314, %v92_v43  }
 0x142   :  { %v310_v44 = vpop.permute.xlu0 %309 }
 0x143   :  { %124 = vperm.xlu0 %314, %v91_v40   ;;  %v311_v45 = vunpack.i.l.bf16 %v310_v44  ;;  %v312_v46 = vunpack.i.h.bf16 %v310_v44  ;;  %v144_v44 = vstv %s143_s12 }
 0x145   :  { %v104_v47 = vsel %vm98_vm12, %v311_v45, 0.0  ;;  %vm145_vm12 = vcmp.eq.s32.totalorder %v144_v44, 1 }
 0x146   :  { %v109_v49 = vsel %vm97_vm13, %v312_v46, %v104_v47 }
 0x147   :  { %147 = vrot.lane.b32.xlu0 %v91_v40, %s358_s27 }
 0x14b   :  { %151 = vrot.lane.b32.xlu0 %v92_v43, %s359_s28  ;;  %v368_v43 = vmov 3  }
 0x14c   :  { %315 = vset.pattern.permute.xlu1 %v368_v43  ;;  %316 = vset.pattern.permute.xlu0 %v368_v43 }
 0x14f   :  { %155 = vrot.lane.b32.xlu0 %v93_v42, %s360_s29 }
 0x1be   :  { %v113_v48 = vpop.permute.xlu1 %112  ;;  %v119_v50 = vpop.permute.xlu0 %118 }
 0x1bf   :  { %v115_v51 = vsel %vm96_vm14, %v113_v48, %v109_v49 }
 0x1c0   :  { %v121_v52 = vsel %vm95_vm15, %v119_v50, %v115_v51 }
 0x1c2   :  { %v125_v53 = vpop.permute.xlu0 %124 }
 0x1c3   :  { %v127_v54 = vsel %vm94_vm1, %v125_v53, %v121_v52 }
 0x1c4   :  { %v128_v55 = vsel %vm34_vm0, %v127_v54, 0.0 }
 0x1c5   :  { %v129_v56 = vrot.slane %v128_v55, 4 }
 0x1c6   :  { %v148_v62 = vpop.permute.xlu0 %147 }
 0x1c7   :  { %v130_v57 = vadd.f32 %v129_v56, %v128_v55 }
 0x1c9   :  { %v131_v58 = vrot.slane %v130_v57, 2 }
 0x1ca   :  { %v152_v8 = vpop.permute.xlu0 %151 }
 0x1cb   :  { %v132_v59 = vadd.f32 %v131_v58, %v130_v57 }
 0x1cd   :  { %v133_v60 = vrot.slane %v132_v59, 1 }
 0x1ce   :  { %v156_v15 = vpop.permute.xlu0 %155 }
 0x1cf   :  { %v463_v61 = vadd.f32 %v133_v60, %v132_v59 }
 0x1d1   :  { %v150_v63 = vsub.f32 %v463_v61, %v148_v62  ;;  %v154_v9 = vsub.f32 %v463_v61, %v152_v8  ;;  %v158_v16 = vsub.f32 %v463_v61, %v156_v15  ;;  %vm136_vm7 = vcmp.gt.f32.partialorder %v463_v61, 0.0 }
 0x1d2   :  { %v137_v34 = vsel %vm136_vm7, 1, %v362_v26  ;;  %vm135_vm11 = vcmp.ge.f32.partialorder %v463_v61, 2.0 }
 0x1d3   :  { %v161_v0 = vmul.f32 6.0, %v150_v63 }
 0x1d5   :  { %vm162_vm2 = vcmp.gt.f32.partialorder %v161_v0, 0.0 }
 0x1d6   :  { %v163_v1 = vsel %vm162_vm2, %v161_v0, 1.0 }
 0x1d7   :  { %165 = vrot.lane.b32.xlu1 %v163_v1, %s357_s26 }
 0x1db   :  { %170 = vrot.lane.b32.xlu1 %v163_v1, %s361_s30 }
 0x249   :  { %v166_v6 = vpop.permute.xlu1 %165 }
 0x24a   :  { %321 = vrcp.f32 %v166_v6 }
 0x24d   :  { %v171_v13 = vpop.permute.xlu1 %170 }
 0x24e   :  { %323 = vrcp.f32 %v171_v13 }
 0x254   :  { %v322_v10 = vpop.eup %321 }
 0x255   :  { %v169_v11 = vmul.f32 %v322_v10, %v154_v9 }
 0x257   :  { %v175_v12 = vmul.f32 %v169_v11, %v169_v11 }
 0x258   :  { %v324_v14 = vpop.eup %323 }
 0x259   :  { %177 = vrot.lane.b32.xlu1 %v175_v12, %s357_s26  ;;  %v174_v17 = vmul.f32 %v324_v14, %v158_v16 }
 0x2cb   :  { %v178_v18 = vpop.permute.xlu1 %177 }
 0x2cc   :  { %v180_v19 = vsub.f32 %v174_v17, %v178_v18 }
 0x2ce   :  { %v181_v20 = vmax.f32 %v180_v19, 0.0 }
 0x2d0   :  { %325 = vrsqrt.f32 %v181_v20  ;;  %vm184_vm3 = vcmp.eq.f32.partialorder %v181_v20, inf  ;;  %v187_v23 = vand.u32 2147483648, %v181_v20  ;;  %vm186_vm4 = vcmp.eq.f32.partialorder %v181_v20, 0.0 }
 0x2da   :  { %v326_v21 = vpop.eup %325 }
 0x2db   :  { %v183_v22 = vmul.f32 %v326_v21, %v181_v20 }
 0x2dd   :  { %v185_v24 = vsel %vm184_vm3, %v181_v20, %v183_v22  ;;  %vm264_vm3 = vcmask 67648  }
 0x2de   :  { %v188_v25 = vsel %vm186_vm4, %v187_v23, %v185_v24  ;;  %vm255_vm4 = vcmask 57344  }
 0x2df   :  { %196 = vrot.lane.b32.xlu0 %v188_v25, %s353_s22  ;;  %vm189_vm5 = vcmp.gt.f32.partialorder %v188_v25, 1e-08 }
 0x2e0   :  { %v190_v27 = vsel %vm189_vm5, 1, %v362_v26 }
 0x2e1   :  { %191 = vrot.lane.b32.xlu1 %v190_v27, %s363_s6 }
 0x351   :  { %v197_v28 = vpop.permute.xlu0 %196 }
 0x352   :  { %v199_v31 = vadd.f32 %v197_v28, %v169_v11 }
 0x353   :  { %v192_v35 = vpop.permute.xlu1 %191 }
 0x354   :  { %vm200_vm6 = vcmp.lt.f32.partialorder %v160_v30, %v199_v31  ;;  %vm193_vm8 = vcmp.ne.s32.totalorder %v192_v35, 0 }
 0x355   :  { %v201_v33 = vsel %vm200_vm6, -1.0, %v364_v32  ;;  %vm194_vm9 = vmand %vm162_vm2, %vm193_vm8 }
 0x356   :  { %203 = vrot.lane.b32.xlu0 %v201_v33, %s353_s22 }
 0x35a   :  { %138 = vrot.lane.b32.xlu0 %v137_v34, %s353_s22 }
 0x3c8   :  { %v204_v36 = vpop.permute.xlu0 %203 }
 0x3c9   :  { %v206_v38 = vsel %vm194_vm9, %v204_v36, 0.0 }
 0x3ca   :  { %208 = vrot.lane.b32.xlu1 %v206_v38, %s365_s7 }
 0x3cc   :  { %v139_v29 = vpop.permute.xlu0 %138 }
 0x3cd   :  { %vm140_vm10 = vcmp.ne.s32.totalorder %v139_v29, 0 }
 0x3ce   :  { %219 = vrot.lane.b32.xlu1 %v85_v37, %s366_s8  ;;  %vm141_vm13 = vmand %vm135_vm11, %vm140_vm10 }
 0x3cf   :  { %vm146_vm14 = vmand %vm141_vm13, %vm145_vm12 }
 0x3d0   :  { %v213_v45 = vsel %vm146_vm14, 1, %v362_v26 }
 0x3d1   :  { %v217_v47 = vrot.slane %v213_v45, %v42_v5 }
 0x3d3   :  { %vm218_vm1 = vcmp.eq.s32.totalorder %v217_v47, 1 }
 0x43c   :  { %v209_v39 = vpop.permute.xlu1 %208 }
 0x43d   :  { %v211_v40 = vadd.f32 %v209_v39, %v407_v2 }
 0x43f   :  { %v212_v41 = vmax.f32 %v211_v40, 0.0 }
 0x440   :  { %v220_v46 = vpop.permute.xlu1 %219 }
 0x441   :  { %v232_v42 = vmul.f32 0.005, %v212_v41  ;;  %224 = vrot.lane.b32.xlu1 %v212_v41, %s367_s9  ;;  %vm221_vm15 = vcmp.ne.s32.totalorder %v220_v46, 0 }
 0x442   :  { %vm222_vm2 = vmand %vm218_vm1, %vm221_vm15 }
 0x443   :  { %234 = vrot.lane.b32.xlu0 %v232_v42, %s367_s9 }
 0x447   :  { %228 = vrot.lane.b32.xlu0 %v407_v2, %s367_s9 }
 0x4b3   :  { %v225_v49 = vpop.permute.xlu1 %224 }
 0x4b5   :  { %v235_v2 = vpop.permute.xlu0 %234 }
 0x4b6   :  { %v237_v48 = vsel %vm222_vm2, %v235_v2, 0.0 }
 0x4b7   :  { %327 = vtanh.f32 %v237_v48 }
 0x4b9   :  { %v229_v50 = vpop.permute.xlu0 %228 }
 0x4ba   :  { %v231_v51 = vsel %vm222_vm2, %v225_v49, %v229_v50 }
 0x4bb   :  { %261 = vrot.lane.b32.xlu0 %v231_v51, %s369_s0 }
 0x4c1   :  { %v328_v52 = vpop.eup %327 }
 0x4c2   :  { %v239_v53 = vmul.f32 %v328_v52, %v328_v52 }
 0x4c4   :  { %v240_v54 = vsub.f32 1.0, %v239_v53 }
 0x4c6   :  { %243 = vperm.xlu1 %315, %v240_v54  }
 0x52d   :  { %v262_v55 = vpop.permute.xlu0 %261 }
 0x52e   :  { %265 = vst.msk [vmem:[%s510_s5] sm:$0x7] %vm264_vm3, %v262_v55  ;;  %s333_s5 = scalar_lea.vmem %s273_s16, 32 }
 0x52f   :  { %p335_p3 = scmp.lt.s32.totalorder %s333_s5, %s329_s17 }
 0x531   :  { %p336_p4 = por %p335_p3, %p334_p2 }
 0x533   :  { %p337_p5 = pnand %p336_p4, %p330_p1 }
 0x545   :  { %v244_v3 = vpop.permute.xlu1 %243 }
 0x546   :  { %v246_v5 = vmul.f32 %v420_v7, %v244_v3 }
 0x548   :  { %v247_v56 = vsel %vm34_vm0, %v246_v5, 0.0 }
 0x549   :  { %v248_v57 = vrot.slane %v247_v56, 4 }
 0x54b   :  { %v249_v58 = vadd.f32 %v248_v57, %v247_v56 }
 0x54d   :  { %v250_v59 = vrot.slane %v249_v58, 2 }
 0x54f   :  { %v251_v60 = vadd.f32 %v250_v59, %v249_v58 }
 0x551   :  { %v252_v61 = vrot.slane %v251_v60, 1 }
 0x553   :  { %v253_v62 = vadd.f32 %v252_v61, %v251_v60 }
 0x555   :  { %v254_v63 = vmul.f32 %v253_v62, %v416_v4 }
 0x557   :  { %256 = vst.msk [vmem:[#allocation3] sm:$0x1] %vm255_vm4, %v254_v63 }
 0x558   :  { %340 = shalt.err (!%p337_p5)
}
 0x559   :  { %s341_s20 = scalar_lea.hbm %s509_s4, 16 }
 0x55a   :  { %p342_p6 = scmp.ne.s32.totalorder %s509_s4, %s341_s20  ;;  %p345_p7 = scmp.lt.u32.totalorder %s341_s20, %s509_s4 }
 0x55c   :  { %p347_p8 = pnand %p345_p7, %p342_p6 }
 0x55e   :  { %350 = shalt.err (!%p347_p8)
}
 0x55f   :  { %275 = dma.vmem_to_hbm [thread:$0]  %s273_s16, 16, %s509_s4, [#allocation4]  }
 0x560   :  { %351 = dma.done.wait [#allocation4], 16  }
 0x561   :  { %352 = vsyncadd [#allocation4], 4294967280 }
 0x562   :  { %283 = vsyncpa [#allocation4], 1 }

</bundles_post_ra>
